<compile_context>
chip_gen: v6e
topology: v6e:2x2x1
jax: 0.10.0
libtpu: 0.0.40
codegen_flags: <defaults>
</compile_context>

<pallas_src>
import functools

import jax
import jax.numpy as jnp
from jax.experimental import pallas as pl
from jax.experimental.pallas import tpu as pltpu


def _sampler_kernel(in_ref, lt_ref, emb_ref, out_ref, *, S):
    x = in_ref[...]                              # (tile, S+8): [probs | u | valid | pad]
    probs = x[:, :S]                             # (tile, S)   seg-class probs
    u = x[:, S:S + 1]                            # (tile, 1)   uniform randoms
    valid = x[:, S + 1:S + 2]                    # (tile, 1)   1.0 if slot < total points

    lt = lt_ref[...]                             # (S, S) triangular ones (k <= j)
    emb = emb_ref[...]                           # (S, E) embedding table

    # Inclusive prefix sum over classes via one MXU matmul.
    csum = jnp.dot(probs, lt, preferred_element_type=jnp.float32)   # (tile, S)
    total = csum[:, S - 1:S]                                        # (tile, 1)

    # Categorical draw: idx = #classes whose cumulative mass <= u * total
    # (matches torch.multinomial(replacement=True); zero-prob classes skipped).
    # TODO(synk): all-zero prob rows silently pick class S-1 where
    # torch.multinomial would raise.
    thresh = u * total
    idx = jnp.sum((thresh >= csum).astype(jnp.float32), axis=-1, keepdims=True)
    idx = jnp.minimum(idx, float(S - 1))                             # (tile, 1)

    # Class-index row via iota (no resident constant row, no unaligned slice).
    cls = jax.lax.broadcasted_iota(jnp.int32, (1, S), 1).astype(jnp.float32)
    one_hot = (cls == idx).astype(jnp.float32) * valid               # mask pre-matmul

    # Embedding lookup as one-hot @ table (MXU). Output is exactly E lanes.
    out_ref[...] = jnp.dot(one_hot, emb, preferred_element_type=jnp.float32)


def _num_tensorcores_per_chip():
    # v7x has 2 TensorCores per chip; v5e/v6e have 1. Default to 1 if unknown.
    try:
        kind = jax.devices()[0].device_kind.lower()
    except Exception:
        return 1
    return 2 if ("v7" in kind or "7x" in kind) else 1


def _pick_row_tile(total_rows, n_cores):
    # Large tiles amortize the ~0.35us per-grid-step overhead; per-row
    # double-buffered footprint is only ~(S+8+E)*2*4 B, so a 4096-row tile
    # stays well under even v7x's smaller VMEM.
    rows8 = ((max(total_rows, 8) + 7) // 8) * 8
    tile = min(4096, rows8)
    # Force >=2 grid steps only on 2-TensorCore parts (v7x) so both cores get
    # work; on 1-TC chips the split just adds step overhead.
    if n_cores >= 2 and tile >= rows8 and rows8 >= 16:
        tile = rows8 // 2
    tile = max(8, (tile // 8) * 8)
    return tile


def ikea_map_sampler(fused_density_map, pt_count, emb_table, key):
    """fused_density_map: (B, 1+S, H, W) f32, NCHW.  pt_count: python scalar."""
    B, C, H, W = fused_density_map.shape
    S = C - 1
    E = emb_table.shape[1]
    N = int(pt_count)                                   # slot capacity per batch
    IN_W = S + 8                                        # fused input slab width

    f32 = jnp.float32
    fused = fused_density_map.astype(f32)

    # ---- glue: density rounding, point extraction, repeat_interleave map ----
    density = jnp.round(fused[:, 0] * float(pt_count)).astype(jnp.int32)   # (B,H,W)
    density_flat = density.reshape(B, H * W)
    density_flat = jnp.where(density_flat >= 1, density_flat, 0)   # where(>= 1-1e-3)
    cum = jnp.cumsum(density_flat, axis=-1)                        # (B, HW)
    totals = cum[:, -1]                                            # (B,)

    slot_ids = jnp.arange(N, dtype=jnp.int32)                      # (N,)
    pix = jax.vmap(lambda cu: jnp.searchsorted(cu, slot_ids, side='right'))(cum)
    pix = jnp.minimum(pix, H * W - 1).astype(jnp.int32)            # (B, N)
    valid = (slot_ids[None, :] < totals[:, None]).astype(f32)      # (B, N)

    row = (pix // W).astype(f32)
    col = (pix % W).astype(f32)
    xn = col * (2.0 / (W - 1.0)) - 1.0       # xy = flip(point)*2/[W-1,H-1] - 1
    yn = row * (2.0 / (H - 1.0)) - 1.0

    # xy does not depend on the sampled class -> compute entirely in wrapper.
    xys = jnp.stack([xn, yn], axis=-1) * valid[:, :, None]          # (B, N, 2)

    # Gather seg probs in the NATIVE channel layout (indices broadcast over S);
    # transpose only the gathered (B, S, N) slab, never the full map.
    probs_c = fused[:, 1:].reshape(B, S, H * W)                     # (B, S, HW)
    probs_g = jnp.take_along_axis(probs_c, pix[:, None, :], axis=2)  # (B, S, N)
    probs = jnp.transpose(probs_g, (0, 2, 1))                        # (B, N, S)

    u = jax.random.uniform(key, (B, N), dtype=f32)

    # Single fused input slab: probs in lanes [0,S), u at lane S, valid at S+1.
    slab = jnp.concatenate(
        [probs, u[:, :, None], valid[:, :, None],
         jnp.zeros((B, N, IN_W - S - 2), f32)], axis=-1)             # (B, N, IN_W)

    # Fold batch into rows; pad rows to a multiple of the row tile.
    total_rows = B * N
    slab2 = slab.reshape(total_rows, IN_W)

    n_cores = _num_tensorcores_per_chip()
    tile = _pick_row_tile(total_rows, n_cores)
    R = ((total_rows + tile - 1) // tile) * tile
    if R > total_rows:
        slab2 = jnp.pad(slab2, ((0, R - total_rows), (0, 0)))

    # Resident constants (hoisted out of the per-step kernel body).
    r_i = jnp.arange(S)[:, None]
    c_i = jnp.arange(S)[None, :]
    lt = (r_i <= c_i).astype(f32)                                    # (S, S)
    emb = emb_table.astype(f32)                                      # (S, E)

    # Size VMEM to the actual double-buffered footprint + generous headroom.
    vmem_need = 4 * (2 * tile * IN_W + 2 * tile * E + 2 * S * S + 2 * S * E)
    vmem_limit = int(min(64 * 1024 * 1024, max(4 * 1024 * 1024, 2 * vmem_need)))

    kernel = functools.partial(_sampler_kernel, S=S)
    out = pl.pallas_call(
        kernel,
        out_shape=jax.ShapeDtypeStruct((R, E), f32),
        grid_spec=pltpu.PrefetchScalarGridSpec(
            num_scalar_prefetch=0,
            grid=(R // tile,),
            in_specs=[pl.BlockSpec((tile, IN_W), lambda i: (i, 0)),
                      pl.BlockSpec((S, S), lambda i: (0, 0)),
                      pl.BlockSpec((S, E), lambda i: (0, 0))],
            out_specs=pl.BlockSpec((tile, E), lambda i: (i, 0))),
        compiler_params=pltpu.CompilerParams(
            dimension_semantics=("parallel",),
            vmem_limit_bytes=vmem_limit),
    )(slab2, lt, emb)

    seg_prior = out[:total_rows].reshape(B, N, E)
    counts = jnp.minimum(totals, N)   # valid slots per batch (capacity-clamped)
    return xys, seg_prior, counts


if __name__ == "__main__":
    B, SEG_CLASSES, EMB_DIM, H, W = 2, 16, 32, 16, 16
    PT_COUNT = 64

    key = jax.random.PRNGKey(0)
    k_dens, k_seg, k_emb, k_u = jax.random.split(key, 4)

    # channel 0: density, normalized so it sums to ~1 per image
    raw = jax.random.uniform(k_dens, (B, 1, H, W), dtype=jnp.float32)
    dens = raw / jnp.sum(raw, axis=(2, 3), keepdims=True)
    # channels 1..S: per-pixel (unnormalized) segmentation class probabilities
    seg_probs = jax.random.uniform(k_seg, (B, SEG_CLASSES, H, W), dtype=jnp.float32)
    fused = jnp.concatenate([dens, seg_probs], axis=1)      # (B, 1+S, H, W)

    # nn.Embedding(seg_classes, emb_dim) weight ~ N(0, 1), deterministic init
    emb_table = jax.random.normal(k_emb, (SEG_CLASSES, EMB_DIM), dtype=jnp.float32)

    xys, seg_prior, counts = ikea_map_sampler(fused, PT_COUNT, emb_table, k_u)
    jax.block_until_ready((xys, seg_prior, counts))

    assert xys.shape == (B, PT_COUNT, 2)
    assert seg_prior.shape == (B, PT_COUNT, EMB_DIM)
    assert counts.shape == (B,)
    print("KERNEL_OK")
</pallas_src>

<mosaic_0001>
module attributes {stable_mosaic.version = 11 : i64} {
  func.func @_sampler_kernel(%arg0: i32, %arg1: memref<128x24xf32, #tpu.memory_space<vmem>>, %arg2: memref<16x16xf32, #tpu.memory_space<vmem>>, %arg3: memref<16x32xf32, #tpu.memory_space<vmem>>, %arg4: memref<128x32xf32, #tpu.memory_space<vmem>>) attributes {dimension_semantics = [#tpu.dimension_semantics<parallel>], iteration_bounds = array<i64: 1>, scalar_prefetch = 0 : i64, scratch_operands = 0 : i64, tpu.core_type = #tpu.core_type<tc>, window_params = [{transform_indices = @transform_0, window_bounds = array<i64: 128, 24>}, {pipeline_mode = #tpu.pipeline_mode<synchronous>, transform_indices = @transform_1, window_bounds = array<i64: 16, 16>}, {pipeline_mode = #tpu.pipeline_mode<synchronous>, transform_indices = @transform_2, window_bounds = array<i64: 16, 32>}, {transform_indices = @transform_3, window_bounds = array<i64: 128, 32>}]} {
    %c0 = arith.constant 0 : index
    %c0_0 = arith.constant 0 : index
    %0 = vector.load %arg1[%c0, %c0_0] : memref<128x24xf32, #tpu.memory_space<vmem>>, vector<128x24xf32>
    %1 = vector.extract_strided_slice %0 {offsets = [0, 0], sizes = [128, 16], strides = [1, 1]} : vector<128x24xf32> to vector<128x16xf32>
    %2 = vector.extract_strided_slice %0 {offsets = [0, 16], sizes = [128, 1], strides = [1, 1]} : vector<128x24xf32> to vector<128x1xf32>
    %3 = vector.extract_strided_slice %0 {offsets = [0, 17], sizes = [128, 1], strides = [1, 1]} : vector<128x24xf32> to vector<128x1xf32>
    %c0_1 = arith.constant 0 : index
    %c0_2 = arith.constant 0 : index
    %4 = vector.load %arg2[%c0_1, %c0_2] : memref<16x16xf32, #tpu.memory_space<vmem>>, vector<16x16xf32>
    %c0_3 = arith.constant 0 : index
    %c0_4 = arith.constant 0 : index
    %5 = vector.load %arg3[%c0_3, %c0_4] : memref<16x32xf32, #tpu.memory_space<vmem>>, vector<16x32xf32>
    %cst = arith.constant dense<0.000000e+00> : vector<128x16xf32>
    %6 = tpu.matmul %1, %4, %cst {dimension_numbers = #tpu.dot_dimension_numbers<[1], [0], [0], [1], [0, 0, 1, 1], [], []>} : vector<128x16xf32>, vector<16x16xf32>, vector<128x16xf32> -> vector<128x16xf32>
    %7 = vector.extract_strided_slice %6 {offsets = [0, 15], sizes = [128, 1], strides = [1, 1]} : vector<128x16xf32> to vector<128x1xf32>
    %8 = arith.mulf %2, %7 : vector<128x1xf32>
    %9 = vector.broadcast %8 : vector<128x1xf32> to vector<128x16xf32>
    %10 = arith.cmpf oge, %9, %6 : vector<128x16xf32>
    %11 = arith.extui %10 : vector<128x16xi1> to vector<128x16xi32>
    %12 = arith.sitofp %11 : vector<128x16xi32> to vector<128x16xf32>
    %cst_5 = arith.constant dense<0.000000e+00> : vector<128xf32>
    %13 = vector.multi_reduction <add>, %12, %cst_5 [1] : vector<128x16xf32> to vector<128xf32>
    %14 = vector.shape_cast %13 : vector<128xf32> to vector<128x1xf32>
    %cst_6 = arith.constant 1.500000e+01 : f32
    %15 = vector.broadcast %cst_6 : f32 to vector<128x1xf32>
    %16 = arith.minimumf %14, %15 : vector<128x1xf32>
    %17 = tpu.iota {dimensions = array<i32: 1>} : vector<1x16xi32>
    %18 = arith.sitofp %17 : vector<1x16xi32> to vector<1x16xf32>
    %19 = vector.broadcast %18 : vector<1x16xf32> to vector<128x16xf32>
    %20 = vector.broadcast %16 : vector<128x1xf32> to vector<128x16xf32>
    %21 = arith.cmpf oeq, %19, %20 : vector<128x16xf32>
    %22 = arith.extui %21 : vector<128x16xi1> to vector<128x16xi32>
    %23 = arith.sitofp %22 : vector<128x16xi32> to vector<128x16xf32>
    %24 = vector.broadcast %3 : vector<128x1xf32> to vector<128x16xf32>
    %25 = arith.mulf %23, %24 : vector<128x16xf32>
    %cst_7 = arith.constant dense<0.000000e+00> : vector<128x32xf32>
    %26 = tpu.matmul %25, %5, %cst_7 {dimension_numbers = #tpu.dot_dimension_numbers<[1], [0], [0], [1], [0, 0, 1, 1], [], []>} : vector<128x16xf32>, vector<16x32xf32>, vector<128x32xf32> -> vector<128x32xf32>
    %c0_8 = arith.constant 0 : index
    %c0_9 = arith.constant 0 : index
    %27 = vector.load %arg4[%c0_8, %c0_9] : memref<128x32xf32, #tpu.memory_space<vmem>>, vector<128x32xf32>
    tpu.vector_store %arg4[%c0_8, %c0_9], %26 {strides = array<i32>} : memref<128x32xf32, #tpu.memory_space<vmem>>, vector<128x32xf32>,
    return
  }
  func.func @transform_0(%arg0: i32) -> (i32, i32) {
    %c0_i32 = arith.constant 0 : i32
    %c0_i32_0 = arith.constant 0 : i32
    return %arg0, %c0_i32 : i32, i32
  }
  func.func @transform_1(%arg0: i32) -> (i32, i32) {
    %c0_i32 = arith.constant 0 : i32
    %c0_i32_0 = arith.constant 0 : i32
    %c0_i32_1 = arith.constant 0 : i32
    return %c0_i32, %c0_i32_0 : i32, i32
  }
  func.func @transform_2(%arg0: i32) -> (i32, i32) {
    %c0_i32 = arith.constant 0 : i32
    %c0_i32_0 = arith.constant 0 : i32
    %c0_i32_1 = arith.constant 0 : i32
    return %c0_i32, %c0_i32_0 : i32, i32
  }
  func.func @transform_3(%arg0: i32) -> (i32, i32) {
    %c0_i32 = arith.constant 0 : i32
    %c0_i32_0 = arith.constant 0 : i32
    return %arg0, %c0_i32 : i32, i32
  }
}

</mosaic_0001>

<bundles_post_ra>
// kernel: tpu_custom_call.1
= control target key start
LH: loop header
LB: loop body
LE: loop exit
PB: predicated region body
PF: predicated region fallthrough
CT: control target
= control target key end

     0   :  { %vm34_vm0 = vcmask 130048   ;;  %v1011_v3 = vmov 17   ;;  %v1013_v35 = vmov 16   ;;  %s1463_s1 = inlined_call_operand.vmem [shape: f32[16,16], index: 1, kind: input, shape index: {}]   ;;  %s1464_s0 = inlined_call_operand.vmem [shape: f32[128,24], index: 0, kind: input, shape index: {}]   ;;  %s1465_s2 = inlined_call_operand.vmem [shape: f32[16,32], index: 2, kind: input, shape index: {}]   ;;  %s1466_s3 = inlined_call_operand.vmem [shape: f32[128,32], index: 3, kind: output, shape index: {}]  }
   0x1   :  { %v31_v0 = vld [vmem:[%s1463_s1 + $0x8] sm:$0xff]  ;;  %v30_v1 = vld [vmem:[%s1463_s1] sm:$0xff]  ;;  %1005 = vset.pattern.permute.xlu0 %v1011_v3  ;;  %1006 = vset.pattern.permute.xlu1 %v1011_v3  ;;  %v1059_v5 = vld [vmem:[%s1464_s0 + $0x10] sm:$0xff]  ;;  %s1012_s1 = smov 1  }
   0x2   :  { %v1044_v2 = vld [vmem:[%s1464_s0] sm:$0xff]  ;;  %945 = vmatprep.subr.mxu0 %v31_v0  ;;  %v1053_v4 = vld [vmem:[%s1464_s0 + $0x8] sm:$0xff]  ;;  %v1068_v6 = vld [vmem:[%s1464_s0 + $0x18] sm:$0xff] }
   0x3   :  { %949 = vmatprep.mubr.msk.f32.mxu0 %vm34_vm0, %v1044_v2  ;;  %946 = vmatpush3.msra.mxu0 %v31_v0  ;;  %v1073_v7 = vld [vmem:[%s1464_s0 + $0x20] sm:$0xff]  ;;  %v1082_v8 = vld [vmem:[%s1464_s0 + $0x28] sm:$0xff]  ;;  %v1087_v9 = vld [vmem:[%s1464_s0 + $0x30] sm:$0xff] }
   0x4   :  { %552 = vperm.xlu0 %1005, %v1044_v2   ;;  %947 = vmatprep.subr.mxu0 %v30_v1  ;;  %v1096_v10 = vld [vmem:[%s1464_s0 + $0x38] sm:$0xff]  ;;  %v1101_v11 = vld [vmem:[%s1464_s0 + $0x40] sm:$0xff]  ;;  %v1110_v12 = vld [vmem:[%s1464_s0 + $0x48] sm:$0xff] }
   0x5   :  { %948 = vmatpush3.msra.mxu0 %v30_v1  ;;  %v1115_v13 = vld [vmem:[%s1464_s0 + $0x50] sm:$0xff]  ;;  %v1124_v14 = vld [vmem:[%s1464_s0 + $0x58] sm:$0xff]  ;;  %v1129_v15 = vld [vmem:[%s1464_s0 + $0x60] sm:$0xff] }
   0x6   :  { %950 = vmatmul.mubr.msk.f32.vlgmr.msra.gmra.mxu0 %vm34_vm0, %v1053_v4  ;;  %v1138_v16 = vld [vmem:[%s1464_s0 + $0x68] sm:$0xff]  ;;  %v1143_v17 = vld [vmem:[%s1464_s0 + $0x70] sm:$0xff]  ;;  %v1152_v18 = vld [vmem:[%s1464_s0 + $0x78] sm:$0xff] }
   0x7   :  { %952 = vmatprep.mubr.msk.f32.mxu0 %vm34_vm0, %v1059_v5 }
   0xa   :  { %953 = vmatmul.mubr.msk.f32.gmra.mxu0 %vm34_vm0, %v1068_v6 }
   0xb   :  { %955 = vmatprep.mubr.msk.f32.mxu0 %vm34_vm0, %v1073_v7 }
   0xe   :  { %956 = vmatmul.mubr.msk.f32.gmra.mxu0 %vm34_vm0, %v1082_v8 }
   0xf   :  { %958 = vmatprep.mubr.msk.f32.mxu0 %vm34_vm0, %v1087_v9 }
  0x12   :  { %959 = vmatmul.mubr.msk.f32.gmra.mxu0 %vm34_vm0, %v1096_v10 }
  0x13   :  { %961 = vmatprep.mubr.msk.f32.mxu0 %vm34_vm0, %v1101_v11 }
  0x16   :  { %962 = vmatmul.mubr.msk.f32.gmra.mxu0 %vm34_vm0, %v1110_v12 }
  0x17   :  { %964 = vmatprep.mubr.msk.f32.mxu0 %vm34_vm0, %v1115_v13 }
  0x1a   :  { %965 = vmatmul.mubr.msk.f32.gmra.mxu0 %vm34_vm0, %v1124_v14 }
  0x1b   :  { %967 = vmatprep.mubr.msk.f32.mxu0 %vm34_vm0, %v1129_v15 }
  0x1e   :  { %968 = vmatmul.mubr.msk.f32.gmra.mxu0 %vm34_vm0, %v1138_v16 }
  0x1f   :  { %970 = vmatprep.mubr.msk.f32.mxu0 %vm34_vm0, %v1143_v17 }
  0x22   :  { %971 = vmatmul.mubr.msk.f32.gmra.mxu0 %vm34_vm0, %v1152_v18 }
  0x7f   :  { %v1233_v36 = vpop.permute.xlu0 %552 }
  0xc6   :  { %v1156_v19 = vpop.f32.mrf.mxu0 }
  0xc7   :  { %246 = vrot.lane.b32.xlu0 %v1156_v19, %s1012_s1 }
  0xc8   :  { %v1160_v20 = vpop.f32.mrf.mxu0 }
  0xca   :  { %v1162_v21 = vpop.f32.mrf.mxu0 }
  0xcb   :  { %244 = vrot.lane.b32.xlu0 %v1160_v20, %s1012_s1  ;;  %250 = vrot.lane.b32.xlu1 %v1162_v21, %s1012_s1 }
  0xcc   :  { %v1168_v22 = vpop.f32.mrf.mxu0 }
  0xce   :  { %v1170_v23 = vpop.f32.mrf.mxu0 }
  0xcf   :  { %248 = vrot.lane.b32.xlu1 %v1168_v22, %s1012_s1 }
  0xd0   :  { %v1174_v24 = vpop.f32.mrf.mxu0 }
  0xd1   :  { %252 = vrot.lane.b32.xlu0 %v1174_v24, %s1012_s1 }
  0xd2   :  { %v1178_v25 = vpop.f32.mrf.mxu0 }
  0xd3   :  { %254 = vrot.lane.b32.xlu1 %v1170_v23, %s1012_s1 }
  0xd4   :  { %v1182_v26 = vpop.f32.mrf.mxu0 }
  0xd5   :  { %256 = vrot.lane.b32.xlu0 %v1182_v26, %s1012_s1 }
  0xd6   :  { %v1186_v27 = vpop.f32.mrf.mxu0 }
  0xd7   :  { %258 = vrot.lane.b32.xlu1 %v1178_v25, %s1012_s1 }
  0xd8   :  { %v1190_v28 = vpop.f32.mrf.mxu0 }
  0xd9   :  { %260 = vrot.lane.b32.xlu0 %v1190_v28, %s1012_s1 }
  0xda   :  { %v1194_v29 = vpop.f32.mrf.mxu0 }
  0xdb   :  { %262 = vrot.lane.b32.xlu1 %v1186_v27, %s1012_s1 }
  0xdc   :  { %v1198_v30 = vpop.f32.mrf.mxu0 }
  0xdd   :  { %264 = vrot.lane.b32.xlu0 %v1198_v30, %s1012_s1 }
  0xde   :  { %v1202_v31 = vpop.f32.mrf.mxu0 }
  0xdf   :  { %266 = vrot.lane.b32.xlu1 %v1194_v29, %s1012_s1 }
  0xe0   :  { %v1206_v32 = vpop.f32.mrf.mxu0 }
  0xe1   :  { %268 = vrot.lane.b32.xlu0 %v1206_v32, %s1012_s1 }
  0xe2   :  { %v1212_v33 = vpop.f32.mrf.mxu0 }
  0xe3   :  { %270 = vrot.lane.b32.xlu1 %v1202_v31, %s1012_s1 }
  0xe4   :  { %v1228_v34 = vpop.f32.mrf.mxu0 }
  0xe5   :  { %560 = vperm.xlu0 %1005, %v1059_v5  }
  0xe7   :  { %274 = vrot.lane.b32.xlu1 %v1212_v33, %s1012_s1 }
  0xe9   :  { %568 = vperm.xlu0 %1005, %v1073_v7  }
  0xeb   :  { %556 = vperm.xlu1 %1006, %v1053_v4  }
  0xed   :  { %576 = vperm.xlu0 %1005, %v1087_v9  }
  0xef   :  { %564 = vperm.xlu1 %1006, %v1068_v6  }
  0xf1   :  { %584 = vperm.xlu0 %1005, %v1101_v11  }
  0xf3   :  { %572 = vperm.xlu1 %1006, %v1082_v8  }
  0xf5   :  { %592 = vperm.xlu0 %1005, %v1115_v13  }
  0xf7   :  { %580 = vperm.xlu1 %1006, %v1096_v10  }
  0xf9   :  { %596 = vperm.xlu0 %1005, %v1124_v14  }
  0xfb   :  { %588 = vperm.xlu1 %1006, %v1110_v12  }
  0xfd   :  { %600 = vperm.xlu0 %1005, %v1129_v15  }
  0xff   :  { %1007 = vset.pattern.permute.xlu1 %v1013_v35 }
 0x101   :  { %272 = vrot.lane.b32.xlu0 %v1228_v34, %s1012_s1 }
 0x105   :  { %604 = vperm.xlu0 %1005, %v1138_v16  }
 0x109   :  { %1008 = vset.pattern.permute.xlu0 %v1013_v35 }
 0x139   :  { %v247_v37 = vpop.permute.xlu0 %246 }
 0x13a   :  { %v293_v38 = vmul.f32 %v247_v37, %v1053_v4 }
 0x13c   :  { %315 = vperm.xlu1 %1007, %v293_v38  }
 0x13d   :  { %v245_v39 = vpop.permute.xlu0 %244  ;;  %v251_v40 = vpop.permute.xlu1 %250 }
 0x13e   :  { %v292_v41 = vmul.f32 %v245_v39, %v1044_v2  ;;  %v295_v43 = vmul.f32 %v251_v40, %v1068_v6  ;;  %v1014_v39 = vmov 0.0  }
 0x140   :  { %310 = vperm.xlu0 %1008, %v292_v41  }
 0x141   :  { %v249_v42 = vpop.permute.xlu1 %248 }
 0x142   :  { %v294_v44 = vmul.f32 %v249_v42, %v1059_v5 }
 0x143   :  { %v253_v45 = vpop.permute.xlu0 %252 }
 0x144   :  { %320 = vperm.xlu1 %1007, %v294_v44   ;;  %325 = vperm.xlu0 %1008, %v295_v43   ;;  %v296_v47 = vmul.f32 %v253_v45, %v1073_v7 }
 0x145   :  { %v255_v46 = vpop.permute.xlu1 %254 }
 0x146   :  { %v297_v48 = vmul.f32 %v255_v46, %v1082_v8 }
 0x147   :  { %v257_v49 = vpop.permute.xlu0 %256 }
 0x148   :  { %330 = vperm.xlu1 %1007, %v296_v47   ;;  %335 = vperm.xlu0 %1008, %v297_v48   ;;  %v298_v51 = vmul.f32 %v257_v49, %v1087_v9 }
 0x149   :  { %v259_v50 = vpop.permute.xlu1 %258 }
 0x14a   :  { %v299_v52 = vmul.f32 %v259_v50, %v1096_v10 }
 0x14b   :  { %v261_v53 = vpop.permute.xlu0 %260 }
 0x14c   :  { %340 = vperm.xlu1 %1007, %v298_v51   ;;  %345 = vperm.xlu0 %1008, %v299_v52   ;;  %v300_v55 = vmul.f32 %v261_v53, %v1101_v11 }
 0x14d   :  { %v263_v54 = vpop.permute.xlu1 %262 }
 0x14e   :  { %v301_v56 = vmul.f32 %v263_v54, %v1110_v12 }
 0x14f   :  { %v265_v57 = vpop.permute.xlu0 %264 }
 0x150   :  { %350 = vperm.xlu1 %1007, %v300_v55   ;;  %355 = vperm.xlu0 %1008, %v301_v56   ;;  %v302_v59 = vmul.f32 %v265_v57, %v1115_v13  ;;  %v33_v57 = vld [vmem:[%s1465_s2 + $0x8] sm:$0xff] }
 0x151   :  { %v267_v58 = vpop.permute.xlu1 %266  ;;  %973 = vmatprep.subr.mxu1 %v33_v57 }
 0x152   :  { %v303_v60 = vmul.f32 %v267_v58, %v1124_v14  ;;  %974 = vmatpush3.msra.mxu1 %v33_v57 }
 0x153   :  { %v269_v61 = vpop.permute.xlu0 %268 }
 0x154   :  { %360 = vperm.xlu1 %1007, %v302_v59   ;;  %365 = vperm.xlu0 %1008, %v303_v60   ;;  %v304_v63 = vmul.f32 %v269_v61, %v1129_v15 }
 0x155   :  { %v271_v62 = vpop.permute.xlu1 %270 }
 0x156   :  { %v305_v0 = vmul.f32 %v271_v62, %v1138_v16 }
 0x158   :  { %370 = vperm.xlu1 %1007, %v304_v63   ;;  %375 = vperm.xlu0 %1008, %v305_v0  }
 0x159   :  { %v275_v1 = vpop.permute.xlu1 %274 }
 0x15a   :  { %v307_v2 = vmul.f32 %v275_v1, %v1152_v18 }
 0x15c   :  { %385 = vperm.xlu0 %1008, %v307_v2  }
 0x160   :  { %v1250_v4 = vpop.permute.xlu0 %560  ;;  %1010 = vset.pattern.permute.xlu0 %v1011_v3 }
 0x164   :  { %v1253_v5 = vpop.permute.xlu0 %568 }
 0x166   :  { %v1267_v13 = vpop.permute.xlu1 %556 }
 0x168   :  { %v1255_v6 = vpop.permute.xlu0 %576 }
 0x16a   :  { %v1269_v14 = vpop.permute.xlu1 %564 }
 0x16c   :  { %v1257_v7 = vpop.permute.xlu0 %584 }
 0x16e   :  { %v1271_v15 = vpop.permute.xlu1 %572 }
 0x170   :  { %v1259_v8 = vpop.permute.xlu0 %592 }
 0x172   :  { %v1273_v16 = vpop.permute.xlu1 %580 }
 0x174   :  { %v1261_v9 = vpop.permute.xlu0 %596 }
 0x176   :  { %v1275_v35 = vpop.permute.xlu1 %588 }
 0x178   :  { %v1263_v10 = vpop.permute.xlu0 %600 }
 0x17c   :  { %v273_v11 = vpop.permute.xlu0 %272 }
 0x17d   :  { %v306_v12 = vmul.f32 %v273_v11, %v1143_v17 }
 0x17f   :  { %380 = vperm.xlu1 %1007, %v306_v12  }
 0x180   :  { %v1277_v37 = vpop.permute.xlu0 %604 }
 0x183   :  { %1009 = vset.pattern.permute.xlu1 %v1011_v3 }
 0x1b7   :  { %v316_v38 = vpop.permute.xlu1 %315 }
 0x1b8   :  { %vm389_vm1 = vcmp.ge.f32.partialorder %v316_v38, %v1156_v19 }
 0x1b9   :  { %v862_v40 = vsel %vm389_vm1, 1.0, %v1014_v39 }
 0x1ba   :  { %v439_v3 = vsel %vm34_vm0, %v862_v40, 0.0 }
 0x1bb   :  { %440 = vadd.xlane.f32.xlu0 %v439_v3  ;;  %v311_v41 = vpop.permute.xlu0 %310 }
 0x1bc   :  { %vm388_vm2 = vcmp.ge.f32.partialorder %v311_v41, %v1160_v20 }
 0x1bd   :  { %v861_v42 = vsel %vm388_vm2, 1.0, %v1014_v39 }
 0x1be   :  { %v436_v43 = vsel %vm34_vm0, %v861_v42, 0.0 }
 0x1bf   :  { %v321_v44 = vpop.permute.xlu1 %320  ;;  %437 = vadd.xlane.f32.xlu1 %v436_v43  ;;  %v326_v45 = vpop.permute.xlu0 %325 }
 0x1c0   :  { %vm390_vm3 = vcmp.ge.f32.partialorder %v321_v44, %v1168_v22  ;;  %vm391_vm4 = vcmp.ge.f32.partialorder %v326_v45, %v1162_v21 }
 0x1c1   :  { %v863_v19 = vsel %vm390_vm3, 1.0, %v1014_v39  ;;  %v864_v46 = vsel %vm391_vm4, 1.0, %v1014_v39 }
 0x1c2   :  { %v442_v47 = vsel %vm34_vm0, %v863_v19, 0.0  ;;  %v445_v48 = vsel %vm34_vm0, %v864_v46, 0.0 }
 0x1c3   :  { %v331_v20 = vpop.permute.xlu1 %330  ;;  %443 = vadd.xlane.f32.xlu0 %v442_v47  ;;  %446 = vadd.xlane.f32.xlu1 %v445_v48  ;;  %v336_v49 = vpop.permute.xlu0 %335 }
 0x1c4   :  { %vm392_vm5 = vcmp.ge.f32.partialorder %v331_v20, %v1174_v24  ;;  %vm393_vm6 = vcmp.ge.f32.partialorder %v336_v49, %v1170_v23 }
 0x1c5   :  { %v865_v22 = vsel %vm392_vm5, 1.0, %v1014_v39  ;;  %v866_v21 = vsel %vm393_vm6, 1.0, %v1014_v39 }
 0x1c6   :  { %v448_v50 = vsel %vm34_vm0, %v865_v22, 0.0  ;;  %v451_v51 = vsel %vm34_vm0, %v866_v21, 0.0 }
 0x1c7   :  { %v341_v52 = vpop.permute.xlu1 %340  ;;  %449 = vadd.xlane.f32.xlu0 %v448_v50  ;;  %452 = vadd.xlane.f32.xlu1 %v451_v51  ;;  %v346_v53 = vpop.permute.xlu0 %345 }
 0x1c8   :  { %vm394_vm7 = vcmp.ge.f32.partialorder %v341_v52, %v1182_v26  ;;  %vm395_vm8 = vcmp.ge.f32.partialorder %v346_v53, %v1178_v25  ;;  %v32_v26 = vld [vmem:[%s1465_s2] sm:$0xff] }
 0x1c9   :  { %v868_v24 = vsel %vm395_vm8, 1.0, %v1014_v39  ;;  %v867_v56 = vsel %vm394_vm7, 1.0, %v1014_v39  ;;  %975 = vmatprep.subr.mxu1 %v32_v26 }
 0x1ca   :  { %v457_v23 = vsel %vm34_vm0, %v868_v24, 0.0  ;;  %v454_v59 = vsel %vm34_vm0, %v867_v56, 0.0  ;;  %976 = vmatpush3.msra.mxu1 %v32_v26 }
 0x1cb   :  { %v351_v54 = vpop.permute.xlu1 %350  ;;  %458 = vadd.xlane.f32.xlu1 %v457_v23  ;;  %v356_v55 = vpop.permute.xlu0 %355 }
 0x1cc   :  { %vm396_vm9 = vcmp.ge.f32.partialorder %v351_v54, %v1190_v28  ;;  %vm397_vm10 = vcmp.ge.f32.partialorder %v356_v55, %v1186_v27 }
 0x1cd   :  { %v869_v25 = vsel %vm396_vm9, 1.0, %v1014_v39  ;;  %v870_v28 = vsel %vm397_vm10, 1.0, %v1014_v39 }
 0x1ce   :  { %v460_v58 = vsel %vm34_vm0, %v869_v25, 0.0  ;;  %v463_v63 = vsel %vm34_vm0, %v870_v28, 0.0 }
 0x1cf   :  { %v361_v60 = vpop.permute.xlu1 %360  ;;  %461 = vadd.xlane.f32.xlu0 %v460_v58  ;;  %455 = vadd.xlane.f32.xlu1 %v454_v59  ;;  %v366_v61 = vpop.permute.xlu0 %365 }
 0x1d0   :  { %vm398_vm11 = vcmp.ge.f32.partialorder %v361_v60, %v1198_v30  ;;  %vm399_vm12 = vcmp.ge.f32.partialorder %v366_v61, %v1194_v29 }
 0x1d1   :  { %v871_v27 = vsel %vm398_vm11, 1.0, %v1014_v39  ;;  %v872_v2 = vsel %vm399_vm12, 1.0, %v1014_v39 }
 0x1d2   :  { %v466_v62 = vsel %vm34_vm0, %v871_v27, 0.0  ;;  %v469_v11 = vsel %vm34_vm0, %v872_v2, 0.0 }
 0x1d3   :  { %v371_v0 = vpop.permute.xlu1 %370  ;;  %467 = vadd.xlane.f32.xlu0 %v466_v62  ;;  %464 = vadd.xlane.f32.xlu1 %v463_v63  ;;  %v376_v1 = vpop.permute.xlu0 %375 }
 0x1d4   :  { %vm400_vm13 = vcmp.ge.f32.partialorder %v371_v0, %v1206_v32  ;;  %vm401_vm14 = vcmp.ge.f32.partialorder %v376_v1, %v1202_v31 }
 0x1d5   :  { %v873_v30 = vsel %vm400_vm13, 1.0, %v1014_v39  ;;  %v874_v38 = vsel %vm401_vm14, 1.0, %v1014_v39 }
 0x1d6   :  { %v472_v29 = vsel %vm34_vm0, %v873_v30, 0.0  ;;  %v475_v40 = vsel %vm34_vm0, %v874_v38, 0.0 }
 0x1d7   :  { %473 = vadd.xlane.f32.xlu0 %v472_v29  ;;  %470 = vadd.xlane.f32.xlu1 %v469_v11  ;;  %v386_v12 = vpop.permute.xlu0 %385 }
 0x1d8   :  { %vm403_vm15 = vcmp.ge.f32.partialorder %v386_v12, %v1212_v33  ;;  %v500_v33 = vlaneseq }
 0x1d9   :  { %v876_v32 = vsel %vm403_vm15, 1.0, %v1014_v39 }
 0x1da   :  { %v481_v31 = vsel %vm34_vm0, %v876_v32, 0.0  ;;  %v501_v43 = vand.u32 127, %v500_v33 }
 0x1db   :  { %476 = vadd.xlane.f32.xlu1 %v475_v40 }
 0x1dc   :  { %v1335_v44 = vcvt.s32.f32 %v501_v43 }
 0x1df   :  { %482 = vadd.xlane.f32.xlu1 %v481_v31 }
 0x1f0   :  { %608 = vperm.xlu1 %1009, %v1143_v17  }
 0x1fa   :  { %v381_v3 = vpop.permute.xlu1 %380 }
 0x1fb   :  { %vm402_vm1 = vcmp.ge.f32.partialorder %v381_v3, %v1228_v34 }
 0x1fc   :  { %v875_v41 = vsel %vm402_vm1, 1.0, %v1014_v39 }
 0x1fd   :  { %v478_v42 = vsel %vm34_vm0, %v875_v41, 0.0 }
 0x1fe   :  { %479 = vadd.xlane.f32.xlu0 %v478_v42 }
 0x214   :  { %612 = vperm.xlu0 %1010, %v1152_v18  }
 0x244   :  { %v441_v45 = vpop.xlane.xlu0 %440 }
 0x245   :  { %v485_v19 = vmin.f32 %v441_v45, 15.0 }
 0x247   :  { %vm504_vm2 = vcmp.eq.f32.partialorder %v1335_v44, %v485_v19 }
 0x248   :  { %v438_v46 = vpop.xlane.xlu1 %437  ;;  %v878_v47 = vsel %vm504_vm2, 1.0, %v1014_v39 }
 0x249   :  { %v484_v17 = vmin.f32 %v438_v46, 15.0  ;;  %v616_v21 = vmul.f32 %v878_v47, %v1267_v13 }
 0x24b   :  { %vm503_vm3 = vcmp.eq.f32.partialorder %v1335_v44, %v484_v17 }
 0x24c   :  { %v447_v34 = vpop.xlane.xlu1 %446  ;;  %v444_v48 = vpop.xlane.xlu0 %443  ;;  %v877_v20 = vsel %vm503_vm3, 1.0, %v1014_v39  ;;  %vm824_vm3 = vcmask 261120  }
 0x24d   :  { %v487_v49 = vmin.f32 %v447_v34, 15.0  ;;  %v486_v18 = vmin.f32 %v444_v48, 15.0  ;;  %v615_v22 = vmul.f32 %v877_v20, %v1233_v36 }
 0x24f   :  { %vm506_vm4 = vcmp.eq.f32.partialorder %v1335_v44, %v487_v49  ;;  %vm505_vm5 = vcmp.eq.f32.partialorder %v1335_v44, %v486_v18  ;;  %977 = vmatprep.mubr.msk.f32.mxu1 %vm34_vm0, %v615_v22 }
 0x250   :  { %v880_v50 = vsel %vm506_vm4, 1.0, %v1014_v39  ;;  %v879_v51 = vsel %vm505_vm5, 1.0, %v1014_v39  ;;  %v453_v52 = vpop.xlane.xlu1 %452  ;;  %978 = vmatmul.mubr.msk.f32.vlgmr.msra.gmra.mxu1 %vm34_vm0, %v616_v21  ;;  %v450_v53 = vpop.xlane.xlu0 %449 }
 0x251   :  { %v618_v24 = vmul.f32 %v880_v50, %v1269_v14  ;;  %v617_v36 = vmul.f32 %v879_v51, %v1250_v4  ;;  %v489_v23 = vmin.f32 %v453_v52, 15.0  ;;  %v488_v13 = vmin.f32 %v450_v53, 15.0 }
 0x253   :  { %vm508_vm6 = vcmp.eq.f32.partialorder %v1335_v44, %v489_v23  ;;  %vm507_vm7 = vcmp.eq.f32.partialorder %v1335_v44, %v488_v13  ;;  %980 = vmatprep.mubr.msk.f32.mxu1 %vm34_vm0, %v617_v36 }
 0x254   :  { %v882_v54 = vsel %vm508_vm6, 1.0, %v1014_v39  ;;  %v881_v55 = vsel %vm507_vm7, 1.0, %v1014_v39  ;;  %v459_v56 = vpop.xlane.xlu1 %458  ;;  %981 = vmatmul.mubr.msk.f32.gmra.mxu1 %vm34_vm0, %v618_v24 }
 0x255   :  { %v620_v57 = vmul.f32 %v882_v54, %v1271_v15  ;;  %v619_v14 = vmul.f32 %v881_v55, %v1253_v5  ;;  %v491_v4 = vmin.f32 %v459_v56, 15.0 }
 0x257   :  { %983 = vmatprep.mubr.msk.f32.mxu1 %vm34_vm0, %v619_v14  ;;  %vm510_vm8 = vcmp.eq.f32.partialorder %v1335_v44, %v491_v4 }
 0x258   :  { %v456_v25 = vpop.xlane.xlu1 %455  ;;  %984 = vmatmul.mubr.msk.f32.gmra.mxu1 %vm34_vm0, %v620_v57  ;;  %v462_v26 = vpop.xlane.xlu0 %461  ;;  %v884_v60 = vsel %vm510_vm8, 1.0, %v1014_v39 }
 0x259   :  { %v490_v58 = vmin.f32 %v456_v25, 15.0  ;;  %v492_v59 = vmin.f32 %v462_v26, 15.0  ;;  %v622_v0 = vmul.f32 %v884_v60, %v1273_v16 }
 0x25b   :  { %vm509_vm9 = vcmp.eq.f32.partialorder %v1335_v44, %v490_v58  ;;  %vm511_vm10 = vcmp.eq.f32.partialorder %v1335_v44, %v492_v59 }
 0x25c   :  { %v883_v15 = vsel %vm509_vm9, 1.0, %v1014_v39  ;;  %v885_v5 = vsel %vm511_vm10, 1.0, %v1014_v39  ;;  %v465_v61 = vpop.xlane.xlu1 %464  ;;  %v468_v28 = vpop.xlane.xlu0 %467 }
 0x25d   :  { %v621_v27 = vmul.f32 %v883_v15, %v1255_v6  ;;  %v493_v62 = vmin.f32 %v465_v61, 15.0  ;;  %v494_v63 = vmin.f32 %v468_v28, 15.0  ;;  %v623_v1 = vmul.f32 %v885_v5, %v1257_v7 }
 0x25f   :  { %vm512_vm11 = vcmp.eq.f32.partialorder %v1335_v44, %v493_v62  ;;  %vm513_vm12 = vcmp.eq.f32.partialorder %v1335_v44, %v494_v63  ;;  %986 = vmatprep.mubr.msk.f32.mxu1 %vm34_vm0, %v621_v27 }
 0x260   :  { %v886_v2 = vsel %vm512_vm11, 1.0, %v1014_v39  ;;  %v887_v30 = vsel %vm513_vm12, 1.0, %v1014_v39  ;;  %v471_v29 = vpop.xlane.xlu1 %470  ;;  %987 = vmatmul.mubr.msk.f32.gmra.mxu1 %vm34_vm0, %v622_v0  ;;  %v474_v6 = vpop.xlane.xlu0 %473 }
 0x261   :  { %v624_v11 = vmul.f32 %v886_v2, %v1275_v35  ;;  %v495_v12 = vmin.f32 %v471_v29, 15.0  ;;  %v496_v16 = vmin.f32 %v474_v6, 15.0  ;;  %989 = vmatprep.mubr.msk.f32.mxu1 %vm34_vm0, %v623_v1  ;;  %v625_v7 = vmul.f32 %v887_v30, %v1259_v8 }
 0x263   :  { %vm514_vm13 = vcmp.eq.f32.partialorder %v1335_v44, %v495_v12  ;;  %vm515_vm14 = vcmp.eq.f32.partialorder %v1335_v44, %v496_v16 }
 0x264   :  { %v888_v38 = vsel %vm514_vm13, 1.0, %v1014_v39  ;;  %v889_v40 = vsel %vm515_vm14, 1.0, %v1014_v39  ;;  %v477_v32 = vpop.xlane.xlu1 %476  ;;  %990 = vmatmul.mubr.msk.f32.gmra.mxu1 %vm34_vm0, %v624_v11 }
 0x265   :  { %v626_v31 = vmul.f32 %v888_v38, %v1261_v9  ;;  %v497_v35 = vmin.f32 %v477_v32, 15.0  ;;  %992 = vmatprep.mubr.msk.f32.mxu1 %vm34_vm0, %v625_v7  ;;  %v627_v3 = vmul.f32 %v889_v40, %v1263_v10 }
 0x267   :  { %vm516_vm15 = vcmp.eq.f32.partialorder %v1335_v44, %v497_v35 }
 0x268   :  { %v890_v8 = vsel %vm516_vm15, 1.0, %v1014_v39  ;;  %993 = vmatmul.mubr.msk.f32.gmra.mxu1 %vm34_vm0, %v626_v31  ;;  %v483_v42 = vpop.xlane.xlu1 %482 }
 0x269   :  { %v628_v41 = vmul.f32 %v890_v8, %v1277_v37  ;;  %995 = vmatprep.mubr.msk.f32.mxu1 %vm34_vm0, %v627_v3  ;;  %v499_v9 = vmin.f32 %v483_v42, 15.0 }
 0x26b   :  { %vm518_vm2 = vcmp.eq.f32.partialorder %v1335_v44, %v499_v9 }
 0x26c   :  { %996 = vmatmul.mubr.msk.f32.gmra.mxu1 %vm34_vm0, %v628_v41  ;;  %v609_v45 = vpop.permute.xlu1 %608  ;;  %v892_v37 = vsel %vm518_vm2, 1.0, %v1014_v39 }
 0x287   :  { %v480_v33 = vpop.xlane.xlu0 %479 }
 0x288   :  { %v498_v43 = vmin.f32 %v480_v33, 15.0 }
 0x28a   :  { %vm517_vm1 = vcmp.eq.f32.partialorder %v1335_v44, %v498_v43 }
 0x28b   :  { %v891_v10 = vsel %vm517_vm1, 1.0, %v1014_v39 }
 0x28c   :  { %v629_v19 = vmul.f32 %v891_v10, %v609_v45 }
 0x28e   :  { %998 = vmatprep.mubr.msk.f32.mxu1 %vm34_vm0, %v629_v19 }
 0x28f   :  { %v613_v46 = vpop.permute.xlu0 %612 }
 0x290   :  { %v630_v17 = vmul.f32 %v892_v37, %v613_v46 }
 0x292   :  { %999 = vmatmul.mubr.msk.f32.gmra.mxu1 %vm34_vm0, %v630_v17 }
 0x310   :  { %v979_v47 = vpop.f32.mrf.mxu1 }
 0x311   :  { %826 = vst.msk [vmem:[%s1466_s3 + $0x8] sm:$0xff] %vm824_vm3, %v979_v47 }
 0x312   :  { %v745_v34 = vpop.f32.mrf.mxu1 }
 0x313   :  { %825 = vst.msk [vmem:[%s1466_s3] sm:$0xff] %vm824_vm3, %v745_v34 }
 0x314   :  { %v982_v44 = vpop.f32.mrf.mxu1 }
 0x315   :  { %828 = vst.msk [vmem:[%s1466_s3 + $0x18] sm:$0xff] %vm824_vm3, %v982_v44 }
 0x316   :  { %v755_v39 = vpop.f32.mrf.mxu1 }
 0x317   :  { %827 = vst.msk [vmem:[%s1466_s3 + $0x10] sm:$0xff] %vm824_vm3, %v755_v39 }
 0x318   :  { %v985_v48 = vpop.f32.mrf.mxu1 }
 0x319   :  { %830 = vst.msk [vmem:[%s1466_s3 + $0x28] sm:$0xff] %vm824_vm3, %v985_v48 }
 0x31a   :  { %v765_v20 = vpop.f32.mrf.mxu1 }
 0x31b   :  { %829 = vst.msk [vmem:[%s1466_s3 + $0x20] sm:$0xff] %vm824_vm3, %v765_v20 }
 0x320   :  { %v988_v49 = vpop.f32.mrf.mxu1 }
 0x321   :  { %832 = vst.msk [vmem:[%s1466_s3 + $0x38] sm:$0xff] %vm824_vm3, %v988_v49 }
 0x322   :  { %v775_v18 = vpop.f32.mrf.mxu1 }
 0x323   :  { %831 = vst.msk [vmem:[%s1466_s3 + $0x30] sm:$0xff] %vm824_vm3, %v775_v18 }
 0x324   :  { %v991_v22 = vpop.f32.mrf.mxu1 }
 0x325   :  { %834 = vst.msk [vmem:[%s1466_s3 + $0x48] sm:$0xff] %vm824_vm3, %v991_v22 }
 0x326   :  { %v785_v21 = vpop.f32.mrf.mxu1 }
 0x327   :  { %833 = vst.msk [vmem:[%s1466_s3 + $0x40] sm:$0xff] %vm824_vm3, %v785_v21 }
 0x328   :  { %v994_v50 = vpop.f32.mrf.mxu1 }
 0x329   :  { %836 = vst.msk [vmem:[%s1466_s3 + $0x58] sm:$0xff] %vm824_vm3, %v994_v50 }
 0x32a   :  { %v795_v51 = vpop.f32.mrf.mxu1 }
 0x32b   :  { %835 = vst.msk [vmem:[%s1466_s3 + $0x50] sm:$0xff] %vm824_vm3, %v795_v51 }
 0x32c   :  { %v997_v52 = vpop.f32.mrf.mxu1 }
 0x32d   :  { %838 = vst.msk [vmem:[%s1466_s3 + $0x68] sm:$0xff] %vm824_vm3, %v997_v52 }
 0x32e   :  { %v805_v53 = vpop.f32.mrf.mxu1 }
 0x32f   :  { %837 = vst.msk [vmem:[%s1466_s3 + $0x60] sm:$0xff] %vm824_vm3, %v805_v53 }
 0x352   :  { %v1000_v24 = vpop.f32.mrf.mxu1 }
 0x353   :  { %840 = vst.msk [vmem:[%s1466_s3 + $0x78] sm:$0xff] %vm824_vm3, %v1000_v24 }
 0x354   :  { %v815_v36 = vpop.f32.mrf.mxu1 }
 0x355   :  { %839 = vst.msk [vmem:[%s1466_s3 + $0x70] sm:$0xff] %vm824_vm3, %v815_v36 }

</bundles_post_ra>
